<compile_context>
chip_gen: v7x
topology: tpu7x:2x2x1
jax: 0.10.0
libtpu: 0.0.40
codegen_flags: <defaults>
</compile_context>

<pallas_src>
import jax
import jax.numpy as jnp
from jax.experimental import pallas as pl
from jax.experimental.pallas import tpu as pltpu


def linear_growth_kernel(ab_ref, x_ref, o_ref):
    # ab_ref: SMEM (2,) float32 -> [a, b]
    # x_ref:  VMEM tile (block_rows, cols) in the input dtype
    # o_ref:  VMEM tile (block_rows, cols) in the (promoted) output dtype
    a = ab_ref[0]
    b = ab_ref[1]
    x = x_ref[...]
    y = a * x.astype(jnp.float32) + b
    o_ref[...] = y.astype(o_ref.dtype)


def _sublane_pack(dtype):
    """Rows per vreg sublane tile for this dtype (8 for 32-bit, 16 for 16-bit, 32 for 8-bit)."""
    itemsize = jnp.dtype(dtype).itemsize
    if itemsize >= 4:
        return 8
    if itemsize == 2:
        return 16
    return 32


def _choose_cols(total, pack):
    """Pick a lane-dense width (multiple of 128) dividing the element count.

    Prefer widths that also make the row count a multiple of the dtype's
    sublane pack (no ragged blocks -> unmasked stores). Returns None if the
    element count is not divisible by 128 (tail fallback path).
    """
    candidates = (4096, 2048, 1024, 512, 256, 128)
    for c in candidates:
        if total % c == 0 and (total // c) % pack == 0:
            return c
    for c in candidates:
        if total % c == 0:
            return c
    return None


def _run_kernel(x2d, ab, out_dtype, target_block_bytes, min_grid_steps, pack):
    M, cols = x2d.shape
    in_itemsize = jnp.dtype(x2d.dtype).itemsize
    out_itemsize = jnp.dtype(out_dtype).itemsize
    bytes_per_row = cols * max(in_itemsize, out_itemsize)

    # Block rows: target ~4 MiB per block (per array), multiple of the dtype's
    # sublane pack, no larger than the (rounded-up) row count.
    rounded_M = -(-M // pack) * pack
    target_rows = max(pack, target_block_bytes // bytes_per_row)
    block_rows = min(target_rows, rounded_M)
    block_rows = max(pack, (block_rows // pack) * pack)

    # Guarantee >= min_grid_steps grid steps (lets v7x shard the "parallel"
    # axis across both TensorCores); never drop below the sublane pack.
    while pl.cdiv(M, block_rows) < min_grid_steps and block_rows > pack:
        block_rows = max(pack, ((block_rows // 2) // pack) * pack)

    grid = (pl.cdiv(M, block_rows),)

    return pl.pallas_call(
        linear_growth_kernel,
        out_shape=jax.ShapeDtypeStruct((M, cols), out_dtype),
        grid=grid,
        in_specs=[
            pl.BlockSpec(memory_space=pltpu.MemorySpace.SMEM),   # [a, b] scalars
            pl.BlockSpec((block_rows, cols), lambda i: (i, 0)),  # x tile
        ],
        out_specs=pl.BlockSpec((block_rows, cols), lambda i: (i, 0)),
        compiler_params=pltpu.CompilerParams(
            dimension_semantics=("parallel",),
            vmem_limit_bytes=48 * 1024 * 1024,  # safe on v5e/v6e/v7x
        ),
        cost_estimate=pl.CostEstimate(
            flops=2 * M * cols,
            transcendentals=0,
            bytes_accessed=M * cols * (in_itemsize + out_itemsize),
        ),
    )(ab, x2d)


def linear_growth_model(x, a, b, *,
                        target_block_bytes=4 * 1024 * 1024,
                        min_grid_steps=8):
    """y = a * x + b, elementwise, computed in a Pallas TPU kernel.

    Output dtype follows torch-style promotion against float32 parameters.
    """
    orig_shape = x.shape
    in_dtype = x.dtype
    out_dtype = jnp.promote_types(in_dtype, jnp.float32)
    total = x.size

    ab = jnp.array([a, b], dtype=jnp.float32)

    if total == 0:
        return jnp.zeros(orig_shape, out_dtype)

    flat = x.reshape(-1)
    pack = _sublane_pack(in_dtype)
    cols = _choose_cols(total, pack)

    if cols is None:
        # Element count not divisible by 128: run the kernel on the largest
        # 128-divisible prefix and do the tiny (<128-elem) tail in plain jnp,
        # avoiding the extra pad-copy + slice HBM pass of the old fallback.
        cols = 128
        main = (total // cols) * cols
        tail = flat[main:]
        tail_out = (ab[0] * tail.astype(jnp.float32) + ab[1]).astype(out_dtype)
        if main == 0:
            return tail_out.reshape(orig_shape)
        head_out = _run_kernel(flat[:main].reshape(-1, cols), ab, out_dtype,
                               target_block_bytes, min_grid_steps, pack)
        out = jnp.concatenate([head_out.reshape(-1), tail_out])
        return out.reshape(orig_shape)

    x2d = flat.reshape(-1, cols)
    out = _run_kernel(x2d, ab, out_dtype, target_block_bytes, min_grid_steps, pack)
    return out.reshape(orig_shape)


if __name__ == "__main__":
    key = jax.random.PRNGKey(0)

    # Parameter init mirroring the PyTorch module's __init__:
    #   a = 1.0 (slope), b = 0.0 (intercept)
    a_param = 1.0
    b_param = 0.0

    # Small input consistent with the forward pass (any tensor shape works).
    x = jax.random.normal(key, (2, 4, 16, 16), dtype=jnp.float32)

    y = linear_growth_model(x, a_param, b_param)
    y = jax.block_until_ready(y)

    # Reference check against plain JAX (same semantics as a*x + b in PyTorch).
    y_ref = a_param * x + b_param
    assert y.shape == x.shape
    assert y.dtype == jnp.promote_types(x.dtype, jnp.float32)
    assert jnp.allclose(y, y_ref, atol=1e-6, rtol=1e-6)

    print("KERNEL_OK")
</pallas_src>

<mosaic_0001>
module attributes {stable_mosaic.version = 11 : i64} {
  func.func @linear_growth_kernel(%arg0: i32, %arg1: memref<2xf32, #tpu.memory_space<smem>>, %arg2: memref<8x256xf32, #tpu.memory_space<vmem>>, %arg3: memref<8x256xf32, #tpu.memory_space<vmem>>) attributes {dimension_semantics = [#tpu.dimension_semantics<parallel>], iteration_bounds = array<i64: 1>, scalar_prefetch = 0 : i64, scratch_operands = 0 : i64, tpu.core_type = #tpu.core_type<tc>, window_params = [{transform_indices = @transform_0, window_bounds = array<i64: 2>}, {transform_indices = @transform_1, window_bounds = array<i64: 8, 256>}, {transform_indices = @transform_2, window_bounds = array<i64: 8, 256>}]} {
    %c0 = arith.constant 0 : index
    %0 = memref.load %arg1[%c0] : memref<2xf32, #tpu.memory_space<smem>>
    %c1 = arith.constant 1 : index
    %1 = memref.load %arg1[%c1] : memref<2xf32, #tpu.memory_space<smem>>
    %c0_0 = arith.constant 0 : index
    %c0_1 = arith.constant 0 : index
    %2 = vector.load %arg2[%c0_0, %c0_1] : memref<8x256xf32, #tpu.memory_space<vmem>>, vector<8x256xf32>
    %3 = vector.broadcast %0 : f32 to vector<8x256xf32>
    %4 = arith.mulf %3, %2 : vector<8x256xf32>
    %5 = vector.broadcast %1 : f32 to vector<8x256xf32>
    %6 = arith.addf %4, %5 : vector<8x256xf32>
    %c0_2 = arith.constant 0 : index
    %c0_3 = arith.constant 0 : index
    %7 = vector.load %arg3[%c0_2, %c0_3] : memref<8x256xf32, #tpu.memory_space<vmem>>, vector<8x256xf32>
    tpu.vector_store %arg3[%c0_2, %c0_3], %6 {strides = array<i32>} : memref<8x256xf32, #tpu.memory_space<vmem>>, vector<8x256xf32>,
    return
  }
  func.func @transform_0(%arg0: i32) -> i32 {
    %c0_i32 = arith.constant 0 : i32
    %c0_i32_0 = arith.constant 0 : i32
    return %c0_i32 : i32
  }
  func.func @transform_1(%arg0: i32) -> (i32, i32) {
    %c0_i32 = arith.constant 0 : i32
    %c0_i32_0 = arith.constant 0 : i32
    return %arg0, %c0_i32 : i32, i32
  }
  func.func @transform_2(%arg0: i32) -> (i32, i32) {
    %c0_i32 = arith.constant 0 : i32
    %c0_i32_0 = arith.constant 0 : i32
    return %arg0, %c0_i32 : i32, i32
  }
}

</mosaic_0001>

<bundles_post_ra>
// kernel: tpu_custom_call.1
= control target key start
LH: loop header
LB: loop body
LE: loop exit
PB: predicated region body
PF: predicated region fallthrough
CT: control target
= control target key end

     0   :  { %7 = vsyncpa [#allocation5], 0  ;;  %s181_s0 = inlined_call_operand.hbm [shape: f32[2], index: 0, kind: input, shape index: {}]   ;;  %s182_s1 = inlined_call_operand.hbm [shape: f32[8,256], index: 1, kind: input, shape index: {}]   ;;  %s183_s2 = inlined_call_operand.hbm [shape: f32[8,256], index: 2, kind: output, shape index: {}]  }
   0x1   :  { %8 = vsyncpa [#allocation3], 0 }
   0x2   :  { %9 = vsyncpa [#allocation4], 0  ;;  %s67_s11 = scalar_lea.hbm %s181_s0, 16 }
   0x3   :  { %p68_p0 = scmp.ne.s32.totalorder %s181_s0, %s67_s11  ;;  %p71_p1 = scmp.lt.u32.totalorder %s67_s11, %s181_s0 }
   0x5   :  { %p73_p2 = pnand %p71_p1, %p68_p0 }
   0x7   :  { %76 = shalt.err (!%p73_p2)
}
   0x8   :  { %s127_s16 = smov [#allocation2]   ;;  %s128_s19 = smov [#allocation6]  }
   0x9   :  { %17 = dma.hbm_to_smem %s181_s0, 16, %s127_s16, [#allocation5]  }
   0xa   :  { %s24_s20 = sshll.u32 %s128_s19, 4  ;;  %s77_s23 = scalar_lea.hbm %s182_s1, 256  ;;  %s25_s20 = int_to_ptr.vmem [resolvable:$true] %s24_s20 }
   0xb   :  { %p78_p3 = scmp.ne.s32.totalorder %s182_s1, %s77_s23  ;;  %p81_p4 = scmp.lt.u32.totalorder %s77_s23, %s182_s1 }
   0xd   :  { %p83_p5 = pnand %p81_p4, %p78_p3 }
   0xf   :  { %86 = shalt.err (!%p83_p5)
}
  0x10   :  { %s87_s28 = scalar_lea.vmem %s25_s20, 256  ;;  %p92_p7 = scmp.lt.s32.totalorder %s25_s20, %s25_s20 }
  0x11   :  { %p88_p6 = scmp.ne.s32.totalorder %s25_s20, %s87_s28  ;;  %p93_p8 = scmp.lt.s32.totalorder %s87_s28, %s87_s28 }
  0x13   :  { %p94_p9 = por %p93_p8, %p92_p7 }
  0x15   :  { %p95_p10 = pnand %p94_p9, %p88_p6 }
  0x17   :  { %98 = shalt.err (!%p95_p10)
}
  0x18   :  { %27 = dma.hbm_to_vmem [thread:$0]  %s182_s1, 256, %s25_s20, [#allocation3]  }
  0x19   :  { %121 = dma.done.wait [#allocation5], 16  }
  0x1a   :  { %122 = vsyncadd [#allocation5], 4294967280 }
  0x1b   :  { %123 = dma.done.wait [#allocation3], 256  }
  0x1c   :  { %124 = vsyncadd [#allocation3], 4294967040 }
  0x1d   :  { %34 = sfence }
  0x1e   :  { %s35_s30 = sld [smem:[#allocation2]]  ;;  %s63_s3 = sld [smem:[#allocation2 + $0x1]]  ;;  %v37_v0 = vld [vmem:[#allocation6] sm:$0xff]  ;;  %v38_v1 = vld [vmem:[#allocation6 + $0x8] sm:$0xff] }
  0x1f   :  { %s129_s4 = smov [#allocation7]  }
  0x20   :  { %s53_s5 = sshll.u32 %s129_s4, 4  ;;  %s54_s5 = int_to_ptr.vmem [resolvable:$true] %s53_s5 }
  0x21   :  { %s99_s1 = scalar_lea.vmem %s54_s5, 256  ;;  %p104_p12 = scmp.lt.s32.totalorder %s54_s5, %s54_s5 }
  0x22   :  { %p100_p11 = scmp.ne.s32.totalorder %s54_s5, %s99_s1  ;;  %p105_p13 = scmp.lt.s32.totalorder %s99_s1, %s99_s1 }
  0x24   :  { %v39_v2 = vstv %s35_s30  ;;  %v42_v3 = vstv %s63_s3  ;;  %p106_p0 = por %p105_p13, %p104_p12 }
  0x25   :  { %v40_v4 = vmul.f32 %v39_v2, %v37_v0  ;;  %v41_v5 = vmul.f32 %v39_v2, %v38_v1 }
  0x26   :  { %p107_p1 = pnand %p106_p0, %p100_p11 }
  0x27   :  { %v43_v6 = vadd.f32 %v42_v3, %v40_v4  ;;  %v44_v7 = vadd.f32 %v42_v3, %v41_v5 }
  0x29   :  { %45 = vst [vmem:[#allocation7] sm:$0xff] %v43_v6  ;;  %46 = vst [vmem:[#allocation7 + $0x8] sm:$0xff] %v44_v7 }
  0x2a   :  { %110 = shalt.err (!%p107_p1)
}
  0x2b   :  { %s111_s8 = scalar_lea.hbm %s183_s2, 256 }
  0x2c   :  { %p112_p2 = scmp.ne.s32.totalorder %s183_s2, %s111_s8  ;;  %p115_p3 = scmp.lt.u32.totalorder %s111_s8, %s183_s2 }
  0x2e   :  { %p117_p4 = pnand %p115_p3, %p112_p2 }
  0x30   :  { %120 = shalt.err (!%p117_p4)
}
  0x31   :  { %56 = dma.vmem_to_hbm [thread:$0]  %s54_s5, 256, %s183_s2, [#allocation4]  }
  0x32   :  { %125 = dma.done.wait [#allocation4], 256  }
  0x33   :  { %126 = vsyncadd [#allocation4], 4294967040 }
  0x34   :  { %60 = vsyncpa [#allocation3], 1 }
  0x35   :  { %61 = vsyncpa [#allocation4], 1 }
  0x36   :  { %62 = vsyncpa [#allocation5], 1 }

</bundles_post_ra>
